<compile_context>
chip_gen: v7x
topology: tpu7x:2x2x1
jax: 0.10.0
libtpu: 0.0.40
codegen_flags: <defaults>
</compile_context>

<pallas_src>
import jax
import jax.numpy as jnp
from jax.experimental import pallas as pl
from jax.experimental.pallas import tpu as pltpu


_VMEM_LIMIT_BYTES = 48 * 1024 * 1024
# Budget for: 2 inputs x 2 pipeline buffers x (TB * c * h * w * 4 B).
_INPUT_BLOCK_BUDGET_BYTES = 32 * 1024 * 1024
_MAX_TB = 32  # bound static unroll / code size per grid step


def _l_spa_kernel(a_ref, b_ref, org_ref, enh_ref, out_ref):
    tb = org_ref.shape[0]          # batch items handled by this grid step
    hp = a_ref.shape[0]
    wp = b_ref.shape[1]

    a = a_ref[...]                 # (hp, c*h) — hoisted out of the TB loop
    bm = b_ref[...]                # (w, wp)

    use_roll = (hp % 8 == 0) and (wp % 128 == 0)
    if use_roll:
        row = jax.lax.broadcasted_iota(jnp.int32, (hp, wp), 0)
        col = jax.lax.broadcasted_iota(jnp.int32, (hp, wp), 1)

    def pooled(x):                 # x: (c*h, w) -> (hp, wp) pooled channel-mean
        t = jnp.dot(a, x, preferred_element_type=jnp.float32)
        return jnp.dot(t, bm, preferred_element_type=jnp.float32)

    def directional(p):
        # F.conv2d(p, k_dir, padding=1) with the four directional kernels:
        #   left : p[y,x] - p[y,x-1]   right: p[y,x] - p[y,x+1]
        #   up   : p[y,x] - p[y-1,x]   down : p[y,x] - p[y+1,x]
        # (zero padding at the borders)
        if use_roll:
            zero = jnp.zeros_like(p)
            nl = jnp.where(col == 0, zero, pltpu.roll(p, shift=1, axis=1))
            nr = jnp.where(col == wp - 1, zero, pltpu.roll(p, shift=-1, axis=1))
            nu = jnp.where(row == 0, zero, pltpu.roll(p, shift=1, axis=0))
            nd = jnp.where(row == hp - 1, zero, pltpu.roll(p, shift=-1, axis=0))
        else:
            zc = jnp.zeros((hp, 1), p.dtype)
            zr = jnp.zeros((1, wp), p.dtype)
            nl = jnp.concatenate([zc, p[:, :-1]], axis=1)
            nr = jnp.concatenate([p[:, 1:], zc], axis=1)
            nu = jnp.concatenate([zr, p[:-1, :]], axis=0)
            nd = jnp.concatenate([p[1:, :], zr], axis=0)
        return p - nl, p - nr, p - nu, p - nd

    # NOTE: torch's weight_diff and E_1 do not contribute to the output E.
    for t in range(tb):            # static unroll over the TB items in this block
        op = pooled(org_ref[t])
        ep = pooled(enh_ref[t])
        ol, orr, ou, od = directional(op)
        el, er, eu, ed = directional(ep)
        e = (ol - el) ** 2 + (orr - er) ** 2 + (ou - eu) ** 2 + (od - ed) ** 2
        out_ref[t] = e[None, :, :]


def _choose_tb(b, item_bytes):
    """Largest divisor of b (<= _MAX_TB) whose double-buffered input blocks fit
    the VMEM budget, keeping >= 2 grid steps when b >= 2 (v7x has 2 TCs)."""
    best = 1
    for tb in range(1, b + 1):
        if b % tb or tb > _MAX_TB:
            continue
        if b >= 2 and (b // tb) < 2:
            continue
        if 2 * 2 * tb * item_bytes <= _INPUT_BLOCK_BUDGET_BYTES:
            best = tb
    return best


def l_spa(org, enhance):
    b, c, h, w = org.shape
    assert h % 4 == 0 and w % 4 == 0, "AvgPool2d(4) assumes spatial dims divisible by 4"
    hp, wp = h // 4, w // 4

    # Collapse (c, h) so the channel mean folds into the row-pooling matmul.
    # Merging contiguous major dims of a row-major array is a bitcast (no copy).
    org2 = org.reshape(b, c * h, w)
    enh2 = enhance.reshape(b, c * h, w)

    # A'[i, ch*h + y] = 0.25/c iff y//4 == i   (channel mean + row pool)
    a_base = (jnp.arange(hp)[:, None] == (jnp.arange(h)[None, :] // 4)).astype(jnp.float32)
    a = jnp.tile(a_base * (0.25 / c), (1, c))                                   # (hp, c*h)
    # B[x, j] = 0.25 iff x//4 == j             (column pool)
    bmat = ((jnp.arange(w)[:, None] // 4) == jnp.arange(wp)[None, :]).astype(jnp.float32) * 0.25

    item_bytes = c * h * w * 4
    tb = _choose_tb(b, item_bytes)
    # TODO(synk): when even tb == 1 exceeds the VMEM budget (very large images,
    # especially on v7x's 64 MiB VMEM) switch to an h-tiled accumulator path.

    return pl.pallas_call(
        _l_spa_kernel,
        out_shape=jax.ShapeDtypeStruct((b, 1, hp, wp), jnp.float32),
        grid=(b // tb,),
        in_specs=[
            pl.BlockSpec((hp, c * h), lambda i: (0, 0)),
            pl.BlockSpec((w, wp), lambda i: (0, 0)),
            pl.BlockSpec((tb, c * h, w), lambda i: (i, 0, 0)),
            pl.BlockSpec((tb, c * h, w), lambda i: (i, 0, 0)),
        ],
        out_specs=pl.BlockSpec((tb, 1, hp, wp), lambda i: (i, 0, 0, 0)),
        compiler_params=pltpu.CompilerParams(
            dimension_semantics=("parallel",),
            vmem_limit_bytes=_VMEM_LIMIT_BYTES,
        ),
    )(a, bmat, org2, enh2)


def l_spa_ref(org, enhance):
    """Plain-JAX reference mirroring the torch forward (for validation)."""
    def pool(x):
        m = jnp.mean(x, axis=1, keepdims=True)              # (b,1,h,w)
        bb, _, h, w = m.shape
        return m.reshape(bb, 1, h // 4, 4, w // 4, 4).mean(axis=(3, 5))

    op, ep = pool(org), pool(enhance)

    def dirs(p):
        pz = jnp.pad(p, ((0, 0), (0, 0), (1, 1), (1, 1)))
        left = p - pz[:, :, 1:-1, :-2]
        right = p - pz[:, :, 1:-1, 2:]
        up = p - pz[:, :, :-2, 1:-1]
        down = p - pz[:, :, 2:, 1:-1]
        return left, right, up, down

    ol, orr, ou, od = dirs(op)
    el, err, eu, ed = dirs(ep)
    return (ol - el) ** 2 + (orr - err) ** 2 + (ou - eu) ** 2 + (od - ed) ** 2


if __name__ == "__main__":
    key = jax.random.PRNGKey(0)
    k1, k2 = jax.random.split(key)
    org = jax.random.uniform(k1, (2, 4, 16, 16), dtype=jnp.float32)
    enhance = jax.random.uniform(k2, (2, 4, 16, 16), dtype=jnp.float32)

    out = jax.block_until_ready(l_spa(org, enhance))
    ref = jax.block_until_ready(l_spa_ref(org, enhance))

    assert out.shape == (2, 1, 4, 4), out.shape
    assert jnp.allclose(out, ref, atol=1e-5, rtol=1e-5), float(jnp.max(jnp.abs(out - ref)))
    print("KERNEL_OK")
</pallas_src>

<mosaic_0001>
module attributes {stable_mosaic.version = 11 : i64} {
  func.func @_l_spa_kernel(%arg0: i32, %arg1: memref<4x64xf32, #tpu.memory_space<vmem>>, %arg2: memref<16x4xf32, #tpu.memory_space<vmem>>, %arg3: memref<1x64x16xf32, #tpu.memory_space<vmem>>, %arg4: memref<1x64x16xf32, #tpu.memory_space<vmem>>, %arg5: memref<1x1x4x4xf32, #tpu.memory_space<vmem>>) attributes {dimension_semantics = [#tpu.dimension_semantics<parallel>], iteration_bounds = array<i64: 2>, scalar_prefetch = 0 : i64, scratch_operands = 0 : i64, tpu.core_type = #tpu.core_type<tc>, window_params = [{pipeline_mode = #tpu.pipeline_mode<synchronous>, transform_indices = @transform_0, window_bounds = array<i64: 4, 64>}, {pipeline_mode = #tpu.pipeline_mode<synchronous>, transform_indices = @transform_1, window_bounds = array<i64: 16, 4>}, {transform_indices = @transform_2, window_bounds = array<i64: 1, 64, 16>}, {transform_indices = @transform_3, window_bounds = array<i64: 1, 64, 16>}, {transform_indices = @transform_4, window_bounds = array<i64: 1, 1, 4, 4>}]} {
    %c0 = arith.constant 0 : index
    %c0_0 = arith.constant 0 : index
    %0 = vector.load %arg1[%c0, %c0_0] : memref<4x64xf32, #tpu.memory_space<vmem>>, vector<4x64xf32>
    %c0_1 = arith.constant 0 : index
    %c0_2 = arith.constant 0 : index
    %1 = vector.load %arg2[%c0_1, %c0_2] : memref<16x4xf32, #tpu.memory_space<vmem>>, vector<16x4xf32>
    %c0_3 = arith.constant 0 : index
    %c0_4 = arith.constant 0 : index
    %c0_5 = arith.constant 0 : index
    %2 = vector.load %arg3[%c0_3, %c0_4, %c0_5] : memref<1x64x16xf32, #tpu.memory_space<vmem>>, vector<1x64x16xf32>
    %3 = vector.shape_cast %2 : vector<1x64x16xf32> to vector<64x16xf32>
    %cst = arith.constant dense<0.000000e+00> : vector<4x16xf32>
    %4 = tpu.matmul %0, %3, %cst {dimension_numbers = #tpu.dot_dimension_numbers<[1], [0], [0], [1], [0, 0, 1, 1], [], []>} : vector<4x64xf32>, vector<64x16xf32>, vector<4x16xf32> -> vector<4x16xf32>
    %cst_6 = arith.constant dense<0.000000e+00> : vector<4x4xf32>
    %5 = tpu.matmul %4, %1, %cst_6 {dimension_numbers = #tpu.dot_dimension_numbers<[1], [0], [0], [1], [0, 0, 1, 1], [], []>} : vector<4x16xf32>, vector<16x4xf32>, vector<4x4xf32> -> vector<4x4xf32>
    %c0_7 = arith.constant 0 : index
    %c0_8 = arith.constant 0 : index
    %c0_9 = arith.constant 0 : index
    %6 = vector.load %arg4[%c0_7, %c0_8, %c0_9] : memref<1x64x16xf32, #tpu.memory_space<vmem>>, vector<1x64x16xf32>
    %7 = vector.shape_cast %6 : vector<1x64x16xf32> to vector<64x16xf32>
    %cst_10 = arith.constant dense<0.000000e+00> : vector<4x16xf32>
    %8 = tpu.matmul %0, %7, %cst_10 {dimension_numbers = #tpu.dot_dimension_numbers<[1], [0], [0], [1], [0, 0, 1, 1], [], []>} : vector<4x64xf32>, vector<64x16xf32>, vector<4x16xf32> -> vector<4x16xf32>
    %cst_11 = arith.constant dense<0.000000e+00> : vector<4x4xf32>
    %9 = tpu.matmul %8, %1, %cst_11 {dimension_numbers = #tpu.dot_dimension_numbers<[1], [0], [0], [1], [0, 0, 1, 1], [], []>} : vector<4x16xf32>, vector<16x4xf32>, vector<4x4xf32> -> vector<4x4xf32>
    %cst_12 = arith.constant 0.000000e+00 : f32
    %10 = vector.broadcast %cst_12 : f32 to vector<4x1xf32>
    %cst_13 = arith.constant 0.000000e+00 : f32
    %11 = vector.broadcast %cst_13 : f32 to vector<1x4xf32>
    %12 = vector.extract_strided_slice %5 {offsets = [0, 0], sizes = [4, 3], strides = [1, 1]} : vector<4x4xf32> to vector<4x3xf32>
    %13 = tpu.concatenate %10, %12 in 1 : vector<4x1xf32>, vector<4x3xf32> -> vector<4x4xf32>
    %14 = vector.extract_strided_slice %5 {offsets = [0, 1], sizes = [4, 3], strides = [1, 1]} : vector<4x4xf32> to vector<4x3xf32>
    %15 = tpu.concatenate %14, %10 in 1 : vector<4x3xf32>, vector<4x1xf32> -> vector<4x4xf32>
    %16 = vector.extract_strided_slice %5 {offsets = [0, 0], sizes = [3, 4], strides = [1, 1]} : vector<4x4xf32> to vector<3x4xf32>
    %17 = tpu.concatenate %11, %16 in 0 : vector<1x4xf32>, vector<3x4xf32> -> vector<4x4xf32>
    %18 = vector.extract_strided_slice %5 {offsets = [1, 0], sizes = [3, 4], strides = [1, 1]} : vector<4x4xf32> to vector<3x4xf32>
    %19 = tpu.concatenate %18, %11 in 0 : vector<3x4xf32>, vector<1x4xf32> -> vector<4x4xf32>
    %20 = arith.subf %5, %13 : vector<4x4xf32>
    %21 = arith.subf %5, %15 : vector<4x4xf32>
    %22 = arith.subf %5, %17 : vector<4x4xf32>
    %23 = arith.subf %5, %19 : vector<4x4xf32>
    %cst_14 = arith.constant 0.000000e+00 : f32
    %24 = vector.broadcast %cst_14 : f32 to vector<4x1xf32>
    %cst_15 = arith.constant 0.000000e+00 : f32
    %25 = vector.broadcast %cst_15 : f32 to vector<1x4xf32>
    %26 = vector.extract_strided_slice %9 {offsets = [0, 0], sizes = [4, 3], strides = [1, 1]} : vector<4x4xf32> to vector<4x3xf32>
    %27 = tpu.concatenate %24, %26 in 1 : vector<4x1xf32>, vector<4x3xf32> -> vector<4x4xf32>
    %28 = vector.extract_strided_slice %9 {offsets = [0, 1], sizes = [4, 3], strides = [1, 1]} : vector<4x4xf32> to vector<4x3xf32>
    %29 = tpu.concatenate %28, %24 in 1 : vector<4x3xf32>, vector<4x1xf32> -> vector<4x4xf32>
    %30 = vector.extract_strided_slice %9 {offsets = [0, 0], sizes = [3, 4], strides = [1, 1]} : vector<4x4xf32> to vector<3x4xf32>
    %31 = tpu.concatenate %25, %30 in 0 : vector<1x4xf32>, vector<3x4xf32> -> vector<4x4xf32>
    %32 = vector.extract_strided_slice %9 {offsets = [1, 0], sizes = [3, 4], strides = [1, 1]} : vector<4x4xf32> to vector<3x4xf32>
    %33 = tpu.concatenate %32, %25 in 0 : vector<3x4xf32>, vector<1x4xf32> -> vector<4x4xf32>
    %34 = arith.subf %9, %27 : vector<4x4xf32>
    %35 = arith.subf %9, %29 : vector<4x4xf32>
    %36 = arith.subf %9, %31 : vector<4x4xf32>
    %37 = arith.subf %9, %33 : vector<4x4xf32>
    %38 = arith.subf %20, %34 : vector<4x4xf32>
    %39 = arith.mulf %38, %38 : vector<4x4xf32>
    %40 = arith.subf %21, %35 : vector<4x4xf32>
    %41 = arith.mulf %40, %40 : vector<4x4xf32>
    %42 = arith.addf %39, %41 : vector<4x4xf32>
    %43 = arith.subf %22, %36 : vector<4x4xf32>
    %44 = arith.mulf %43, %43 : vector<4x4xf32>
    %45 = arith.addf %42, %44 : vector<4x4xf32>
    %46 = arith.subf %23, %37 : vector<4x4xf32>
    %47 = arith.mulf %46, %46 : vector<4x4xf32>
    %48 = arith.addf %45, %47 : vector<4x4xf32>
    %49 = vector.shape_cast %48 : vector<4x4xf32> to vector<1x4x4xf32>
    %c0_16 = arith.constant 0 : index
    %c0_17 = arith.constant 0 : index
    %c0_18 = arith.constant 0 : index
    %c0_19 = arith.constant 0 : index
    %50 = vector.load %arg5[%c0_16, %c0_17, %c0_18, %c0_19] : memref<1x1x4x4xf32, #tpu.memory_space<vmem>>, vector<1x1x4x4xf32>
    %51 = vector.shape_cast %50 : vector<1x1x4x4xf32> to vector<1x4x4xf32>
    %52 = vector.shape_cast %49 : vector<1x4x4xf32> to vector<1x1x4x4xf32>
    tpu.vector_store %arg5[%c0_16, %c0_17, %c0_18, %c0_19], %52 {strides = array<i32>} : memref<1x1x4x4xf32, #tpu.memory_space<vmem>>, vector<1x1x4x4xf32>,
    return
  }
  func.func @transform_0(%arg0: i32) -> (i32, i32) {
    %c0_i32 = arith.constant 0 : i32
    %c0_i32_0 = arith.constant 0 : i32
    %c0_i32_1 = arith.constant 0 : i32
    return %c0_i32, %c0_i32_0 : i32, i32
  }
  func.func @transform_1(%arg0: i32) -> (i32, i32) {
    %c0_i32 = arith.constant 0 : i32
    %c0_i32_0 = arith.constant 0 : i32
    %c0_i32_1 = arith.constant 0 : i32
    return %c0_i32, %c0_i32_0 : i32, i32
  }
  func.func @transform_2(%arg0: i32) -> (i32, i32, i32) {
    %c0_i32 = arith.constant 0 : i32
    %c0_i32_0 = arith.constant 0 : i32
    %c0_i32_1 = arith.constant 0 : i32
    return %arg0, %c0_i32, %c0_i32_0 : i32, i32, i32
  }
  func.func @transform_3(%arg0: i32) -> (i32, i32, i32) {
    %c0_i32 = arith.constant 0 : i32
    %c0_i32_0 = arith.constant 0 : i32
    %c0_i32_1 = arith.constant 0 : i32
    return %arg0, %c0_i32, %c0_i32_0 : i32, i32, i32
  }
  func.func @transform_4(%arg0: i32) -> (i32, i32, i32, i32) {
    %c0_i32 = arith.constant 0 : i32
    %c0_i32_0 = arith.constant 0 : i32
    %c0_i32_1 = arith.constant 0 : i32
    %c0_i32_2 = arith.constant 0 : i32
    return %arg0, %c0_i32, %c0_i32_0, %c0_i32_1 : i32, i32, i32, i32
  }
}

</mosaic_0001>

<bundles_post_ra>
// kernel: tpu_custom_call.1
= control target key start
LH: loop header
LB: loop body
LE: loop exit
PB: predicated region body
PF: predicated region fallthrough
CT: control target
= control target key end

     0   :  { %9 = vsyncpa [#allocation3], 0  ;;  %s1067_s0 = inlined_call_operand.vmem [shape: f32[4,64], index: 0, kind: input, shape index: {}]   ;;  %s1068_s1 = inlined_call_operand.vmem [shape: f32[16,4], index: 1, kind: input, shape index: {}]   ;;  %s1069_s2 = inlined_call_operand.vmem [shape: f32[2,64,16], index: 2, kind: input, shape index: {}]   ;;  %s1070_s3 = inlined_call_operand.vmem [shape: f32[2,64,16], index: 3, kind: input, shape index: {}]   ;;  %s1071_s4 = inlined_call_operand.hbm [shape: f32[2,1,4,4], index: 4, kind: output, shape index: {}]  }
   0x1   :  { %11 = vsyncpa [#allocation3 + $0x1], 0  ;;  %s930_s15 = smov 0   ;;  %s932_s16 = smov 0  }
   0x2   :  { %s934_s17 = smov 0   ;;  %s936_s18 = smov 0  }
   0x3 LB: > { %s951_s19 = sadd.s32 4294967295, %s897_s18   ;;  %s666_s20 = sadd.s32 4294967294, %s897_s18   ;;  %s897_s18 = sphi %s936_s18, %s1077_s18   ;;  %s893_s17 = sphi %s934_s17, %s1076_s17   ;;  %s889_s16 = sphi %s932_s16, %s1075_s16   ;;  %s885_s15 = sphi %s930_s15, %s1074_s15  }
   0x4   : > { %s955_s21 = sadd.s32 1, %s897_s18   ;;  %s118_s22 = sadd.s32 1, %s893_s17 }
   0x5   : > { %s115_s23 = ssub.s32 %s897_s18, %s955_s21  ;;  %p128_p0 = scmp.ne.s32.totalorder %s893_s17, %s889_s16 }
   0x6   : > { %p116_p1 = scmp.eq.s32.totalorder %s115_s23, 0  ;;  %p129_p2 = scmp.eq.s32.totalorder %s951_s19, 1 }
   0x7   : > { %p134_p3 = scmp.ne.s32.totalorder %s889_s16, %s885_s15  ;;  %p135_p4 = scmp.eq.s32.totalorder %s666_s20, 1 }
   0x8   : > { %s966_s24 = scalar_select %p116_p1, %s893_s17, %s118_s22  }
   0x9   : > { %p968_p5 = por %p129_p2, %p128_p0  ;;  %p972_p6 = por %p135_p4, %p134_p3 }
   0xa   : > { %p669_p7 = scmp.ge.s32.totalorder %s897_s18, 1  ;;  %p175_p8 = scmp.lt.s32.totalorder %s897_s18, 3 }
   0xc   : > { %p176_p9 = pnand %p669_p7, %p175_p8 }
   0xd   : > { %p206_p10 = scmp.lt.s32.totalorder (!%p176_p9), %s951_s19, 1  ;;  %v899_v0 = vmov (!%p176_p9), 0.0|0.0   ;;  %vm900_vm0 = vmmov (!%p176_p9), 0   ;;  %v901_v1 = vmov (!%p176_p9), 0.0   ;;  %v217_v2 = vld [vmem:[%s1068_s1] sm:$0xff] (!%p176_p9)  ;;  %v218_v3 = vld [vmem:[%s1068_s1 + $0x8] sm:$0xff] (!%p176_p9) }
   0xe   : > { %179 = sbr.rel (%p176_p9) target bundleno = 841 (0x349), region = 36  ;;  %761 = vmatprep.subr.bf16.mxu0 (!%p176_p9), %v899_v0  ;;  %725 = vmatprep.mubr.msk.f32.mxu0 (!%p176_p9), %vm900_vm0, %v901_v1  ;;  %v774_v4 = vpack.c.bf16 (!%p176_p9), %v218_v3, %v217_v2  ;;  %v216_v17 = vld [vmem:[%s1067_s0] sm:$0xf] (!%p176_p9)  ;;  %vm227_vm1 = vcmask (!%p176_p9), 523264   ;;  %vm301_vm2 = vcmask (!%p176_p9), 130048   ;;  %s902_s20 = smov (!%p176_p9), 1  }
   0xf   : > { %773 = vmatprep.subr.bf16.mxu1 (!%p176_p9), %v899_v0  ;;  %732 = vmatprep.mubr.msk.f32.mxu1 (!%p176_p9), %vm900_vm0, %v901_v1  ;;  %s903_s22 = smov (!%p176_p9), 127   ;;  %vm539_vm3 = vcmask (!%p176_p9), 1040384   ;;  %vm543_vm4 = vcmask (!%p176_p9), 1042432   ;;  %vm530_vm5 = vcmask (!%p176_p9), 7168   ;;  %vm535_vm6 = vcmask (!%p176_p9), 23552   ;;  %s203_s23 = sand.u32 (!%p176_p9), 1, %s889_s16  }
  0x10   : > { %775 = vmatpush3.bf16.msra.mxu1 (!%p176_p9), %v774_v4  ;;  %s670_s27 = sshll.u32 (!%p176_p9), %s203_s23, 2  ;;  %s680_s28 = sshll.u32 (!%p176_p9), %s951_s19, 6  ;;  %vm579_vm7 = vcmask (!%p176_p9), 27648  }
  0x11   : > { %776 = vmatprep.subr.bf16.mxu1 (!%p176_p9), %v899_v0  ;;  %s205_s29 = scalar_lea.vmem (!%p176_p9), [#allocation2], %s670_s27  ;;  %s1025_s7 = scalar_lea.hbm (!%p176_p9), %s1071_s4, %s680_s28 }
  0x12   : > { %s595_s30 = sshll.u32 (!%p176_p9), %s205_s29, 4  ;;  %s582_s8 = scalar_lea.sflag (!%p176_p9), [#allocation3], %s203_s23  ;;  %s1027_s30 = int_to_ptr.vmem [resolvable:$true] %s595_s30 }
  0x15   : > { %s988_s5 = scalar_select %p206_p10, %s951_s19, 1 }
  0x16   : > { %s904_s19 = smov [#allocation2]  }
  0x17   : > { %s683_s6 = sshll.u32 %s988_s5, 6  ;;  %s839_s10 = sshll.u32 %s904_s19, 4  ;;  %s840_s10 = int_to_ptr.vmem [resolvable:$false] %s839_s10 }
  0x18   : > { %s210_s9 = scalar_lea.vmem %s1069_s2, %s683_s6  ;;  %s215_s14 = scalar_lea.vmem %s1070_s3, %s683_s6 }
  0x19   : > { %v219_v5 = vld [vmem:[%s210_s9] sm:$0xff]  ;;  %v220_v6 = vld [vmem:[%s210_s9 + $0x8] sm:$0xff]  ;;  %v221_v7 = vld [vmem:[%s210_s9 + $0x10] sm:$0xff]  ;;  %s841_s11 = scalar_lea.vmem %s840_s10, 128  ;;  %p842_p0 = scmp.lt.s32.totalorder %s1027_s30, %s840_s10 }
  0x1a   : > { %v762_v8 = vpack.c.bf16 %v220_v6, %v219_v5  ;;  %v222_v9 = vld [vmem:[%s210_s9 + $0x18] sm:$0xff]  ;;  %v223_v11 = vld [vmem:[%s210_s9 + $0x20] sm:$0xff]  ;;  %v224_v12 = vld [vmem:[%s210_s9 + $0x28] sm:$0xff] }
  0x1b   : > { %v765_v10 = vpack.c.bf16 %v222_v9, %v221_v7  ;;  %v768_v13 = vpack.c.bf16 %v224_v12, %v223_v11  ;;  %v225_v14 = vld [vmem:[%s210_s9 + $0x30] sm:$0xff]  ;;  %v226_v15 = vld [vmem:[%s210_s9 + $0x38] sm:$0xff]  ;;  %v375_v18 = vld [vmem:[%s215_s14] sm:$0xff]  ;;  %s835_s9 = scalar_lea.vmem %s1027_s30, 64 }
  0x1c   : > { %763 = vmatpush3.bf16.msra.mxu0 %v762_v8  ;;  %v771_v16 = vpack.c.bf16 %v226_v15, %v225_v14  ;;  %v376_v19 = vld [vmem:[%s215_s14 + $0x8] sm:$0xff]  ;;  %v377_v21 = vld [vmem:[%s215_s14 + $0x10] sm:$0xff]  ;;  %v378_v22 = vld [vmem:[%s215_s14 + $0x18] sm:$0xff]  ;;  %p836_p11 = scmp.ne.s32.totalorder %s1027_s30, %s835_s9  ;;  %p843_p1 = scmp.lt.s32.totalorder %s841_s11, %s835_s9 }
  0x1d   : > { %764 = vmatprep.subr.bf16.mxu0 %v899_v0  ;;  %v777_v20 = vpack.c.bf16 %v376_v19, %v375_v18  ;;  %v780_v25 = vpack.c.bf16 %v378_v22, %v377_v21  ;;  %v379_v26 = vld [vmem:[%s215_s14 + $0x20] sm:$0xff]  ;;  %v380_v27 = vld [vmem:[%s215_s14 + $0x28] sm:$0xff]  ;;  %v381_v29 = vld [vmem:[%s215_s14 + $0x30] sm:$0xff] }
  0x1e   : > { %v783_v28 = vpack.c.bf16 %v380_v27, %v379_v26  ;;  %v382_v30 = vld [vmem:[%s215_s14 + $0x38] sm:$0xff]  ;;  %p837_p12 = pnand %p836_p11, %p968_p5  ;;  %p844_p2 = por %p843_p1, %p842_p0 }
  0x1f   : > { %v786_v31 = vpack.c.bf16 %v382_v30, %v381_v29 }
  0x20   : > { %766 = vmatpush3.bf16.msra.mxu0 %v765_v10  ;;  %p838_p13 = pneg %p837_p12 }
  0x21   : > { %767 = vmatprep.subr.bf16.mxu0 %v899_v0 }
  0x22   : > { %p845_p3 = pnand %p844_p2, %p838_p13 }
  0x24   : > { %769 = vmatpush3.bf16.msra.mxu0 %v768_v13 }
  0x25   : > { %770 = vmatprep.subr.bf16.mxu0 %v899_v0 }
  0x28   : > { %772 = vmatpush3.bf16.msra.mxu0 %v771_v16 }
  0x29   : > { %788 = vmatprep.subr.bf16.mxu0 %v899_v0 }
  0x2b   : > { %726 = vmatmul.mubr.msk.f32.vlgmr.msra.gmra.mrb[0].mxu0 %vm227_vm1, %v216_v17 }
  0x2c   : > { %790 = vmatpush3.bf16.msra.mxu0 %v774_v4  ;;  %758 = vmatprep.mubr.msk.f32.mxu0 %vm900_vm0, %v901_v1 }
  0xfe   : > { %v297_v23 = vpop.f32.mrb[0].mxu0 }
  0xff   : > { %v727_v24 = vpop.f32.mrb[1].mxu0  ;;  %733 = vmatmul.mubr.msk.f32.vlgmr.msra.gmra.mrb[0].mxu1 %vm301_vm2, %v297_v23 }
 0x100   : > { %778 = vmatpush3.bf16.msra.mxu1 %v777_v20  ;;  %751 = vmatprep.mubr.msk.f32.mxu1 %vm900_vm0, %v901_v1 }
 0x101   : > { %779 = vmatprep.subr.bf16.mxu1 %v899_v0 }
 0x104   : > { %781 = vmatpush3.bf16.msra.mxu1 %v780_v25 }
 0x105   : > { %782 = vmatprep.subr.bf16.mxu1 %v899_v0 }
 0x108   : > { %784 = vmatpush3.bf16.msra.mxu1 %v783_v28 }
 0x109   : > { %785 = vmatprep.subr.bf16.mxu1 %v899_v0 }
 0x10c   : > { %787 = vmatpush3.bf16.msra.mxu1 %v786_v31 }
 0x10f   : > { %752 = vmatmul.mubr.msk.f32.vlgmr.msra.gmra.mrb[2].mxu1 %vm227_vm1, %v216_v17 }
 0x1d2   : > { %v371_v32 = vpop.f32.mrb[0].mxu1 }
 0x1d3   : > { %527 = vrot.lane.b32.xlu0 %v371_v32, %s902_s20  ;;  %v734_v33 = vpop.f32.mrb[1].mxu1  ;;  %v537_v36 = vrot.slane %v371_v32, 7  ;;  %v541_v37 = vrot.slane %v371_v32, 1 }
 0x1d5   : > { %v540_v40 = vsel %vm539_vm3, 0.0, %v537_v36  ;;  %v544_v42 = vsel %vm543_vm4, %v541_v37, 0.0 }
 0x1d6   : > { %v547_v46 = vsub.f32 %v371_v32, %v540_v40  ;;  %v548_v48 = vsub.f32 %v371_v32, %v544_v42 }
 0x1d7   : > { %532 = vrot.lane.b32.xlu0 %v371_v32, %s903_s22 }
 0x1e2   : > { %v449_v34 = vpop.f32.mrb[2].mxu1 }
 0x1e3   : > { %v753_v35 = vpop.f32.mrb[3].mxu1  ;;  %759 = vmatmul.mubr.msk.f32.vlgmr.msra.gmra.mrb[2].mxu0 %vm301_vm2, %v449_v34 }
 0x245   : > { %v528_v52 = vpop.permute.xlu0 %527 }
 0x246   : > { %v531_v53 = vsel %vm530_vm5, 0.0, %v528_v52 }
 0x247   : > { %v545_v57 = vsub.f32 %v371_v32, %v531_v53 }
 0x249   : > { %v533_v54 = vpop.permute.xlu0 %532 }
 0x24a   : > { %v536_v59 = vsel %vm535_vm6, %v533_v54, 0.0 }
 0x24b   : > { %v546_v63 = vsub.f32 %v371_v32, %v536_v59 }
 0x2b6   : > { %v522_v38 = vpop.f32.mrb[2].mxu0 }
 0x2b7   : > { %550 = vrot.lane.b32.xlu1 %v522_v38, %s902_s20  ;;  %v760_v39 = vpop.f32.mrb[3].mxu0  ;;  %v558_v41 = vrot.slane %v522_v38, 7  ;;  %v561_v43 = vrot.slane %v522_v38, 1 }
 0x2b9   : > { %v560_v44 = vsel %vm539_vm3, 0.0, %v558_v41  ;;  %v563_v45 = vsel %vm543_vm4, %v561_v43, 0.0 }
 0x2ba   : > { %v566_v47 = vsub.f32 %v522_v38, %v560_v44  ;;  %v567_v49 = vsub.f32 %v522_v38, %v563_v45 }
 0x2bb   : > { %554 = vrot.lane.b32.xlu1 %v522_v38, %s903_s22 }
 0x2bc   : > { %v573_v50 = vsub.f32 %v547_v46, %v566_v47  ;;  %v576_v51 = vsub.f32 %v548_v48, %v567_v49 }
 0x2be   : > { %v574_v5 = vmul.f32 %v573_v50, %v573_v50  ;;  %v577_v7 = vmul.f32 %v576_v51, %v576_v51 }
 0x329   : > { %v551_v55 = vpop.permute.xlu1 %550 }
 0x32a   : > { %v553_v56 = vsel %vm530_vm5, 0.0, %v551_v55 }
 0x32b   : > { %v564_v58 = vsub.f32 %v522_v38, %v553_v56 }
 0x32d   : > { %v568_v60 = vsub.f32 %v545_v57, %v564_v58  ;;  %v555_v61 = vpop.permute.xlu1 %554 }
 0x32e   : > { %v557_v62 = vsel %vm535_vm6, %v555_v61, 0.0 }
 0x32f   : > { %v565_v0 = vsub.f32 %v522_v38, %v557_v62  ;;  %v569_v2 = vmul.f32 %v568_v60, %v568_v60 }
 0x331   : > { %v570_v1 = vsub.f32 %v546_v63, %v565_v0 }
 0x333   : > { %v571_v3 = vmul.f32 %v570_v1, %v570_v1 }
 0x335   : > { %v572_v4 = vadd.f32 %v571_v3, %v569_v2 }
 0x337   : > { %v575_v6 = vadd.f32 %v574_v5, %v572_v4 }
 0x339   : > { %v578_v8 = vadd.f32 %v577_v7, %v575_v6 }
 0x33b   : > { %580 = vst.msk [vmem:[%s205_s29] sm:$0xf] %vm579_vm7, %v578_v8 }
 0x33c   : > { %848 = shalt.err (!%p845_p3)
}
 0x33d   : > { %s849_s12 = scalar_lea.hbm %s1025_s7, 64  ;;  %s853_s20 = scalar_lea.hbm %s1071_s4, 128 }
 0x33e   : > { %p850_p4 = scmp.ne.s32.totalorder %s1025_s7, %s849_s12  ;;  %p854_p9 = scmp.lt.u32.totalorder %s1025_s7, %s1071_s4 }
 0x33f   : > { %p855_p10 = scmp.lt.u32.totalorder %s853_s20, %s849_s12  ;;  %p857_p12 = scmp.lt.u32.totalorder %s849_s12, %s1025_s7 }
 0x340   : > { %p851_p7 = pnand %p850_p4, %p968_p5 }
 0x341   : > { %p856_p11 = por %p855_p10, %p854_p9 }
 0x342   : > { %p852_p8 = pneg %p851_p7 }
 0x343   : > { %p858_p13 = por %p857_p12, %p856_p11 }
 0x345   : > { %p859_p0 = pnand %p858_p13, %p852_p8 }
 0x347   : > { %862 = shalt.err (!%p859_p0)
}
 0x348   : > { %791 = dma.vmem_to_hbm [thread:$0]  (%p968_p5), %s1027_s30, 64, %s1025_s7, %s582_s8  }
 0x349 PF: > { %p797_p1 = scmp.ge.s32.totalorder %s897_s18, 2  ;;  %s607_s27 = sand.u32 1, %s885_s15  }
 0x34a   : > { %s608_s28 = scalar_lea.sflag [#allocation3], %s607_s27 }
 0x34b   : > { %p794_p2 = pnand %p797_p1, %p972_p6 }
 0x34d   : > { %880 = dma.done.wait (!%p794_p2), %s608_s28, 64  }
 0x34e   : > { %882 = vsyncadd (!%p794_p2), %s608_s28, 4294967232  ;;  %p14_p3 = scmp.ge.s32.totalorder %s955_s21, 4   ;;  %s1074_s15 = smov %s889_s16 }
 0x34f   : > { %s1075_s16 = smov %s893_s17  ;;  %s1076_s17 = smov %s966_s24 }
 0x350   : > { %s1077_s18 = smov %s955_s21  ;;  %16 = sbr.rel (!%p14_p3) target bundleno = 3 (0x3), region = 74 }
 0x357   :  { %613 = vsyncpa [#allocation3], 1 }
 0x358   :  { %615 = vsyncpa [#allocation3 + $0x1], 1 }

</bundles_post_ra>
